<compile_context>
chip_gen: v6e
topology: v6e:2x2x1
jax: 0.10.0
libtpu: 0.0.40
codegen_flags: <defaults>
</compile_context>

<pallas_src>
import functools

import jax
import jax.numpy as jnp
import numpy as np
from jax import lax
from jax.experimental import pallas as pl
from jax.experimental.pallas import tpu as pltpu


def _round_up(n, m):
    return ((n + m - 1) // m) * m


# ----------------------------- Pallas kernel ------------------------------ #
def _qrh_kernel(x_ref, pt_ref, mlp_ref, head_ref, out_ref, *,
                proprio_dim, slab_w, final_dim, grip_col):
    """One batch block of the QueryRegressionHead forward pass.

    x_ref    : (TB, final_dim)   query feature x
    pt_ref   : (TB, proprio_dim) proprio_task_emb
    mlp_ref  : (R1, W)  packed [w1 | w2 | wg_row | b1 | b2] slab (zero padded)
    head_ref : (R2, OUTW) packed [wp|wo | bias_row(bp|bo|bg)] slab (zero padded)
    out_ref  : (TB, OUTW) fused output: pos(0:3) | ori(3:6) | grip(6:7) | pad
    """
    x = x_ref[...]
    pt = pt_ref[...]

    # Static slices of the packed parameter slabs.
    w1 = mlp_ref[0:proprio_dim, :]                        # (P, W)
    w2 = mlp_ref[proprio_dim:proprio_dim + slab_w, :]     # (W, W)
    r = proprio_dim + slab_w
    wg_row = mlp_ref[r:r + 1, :]                          # (1, W)  gripper_linear weight (transposed)
    b1 = mlp_ref[r + 1:r + 2, :]                          # (1, W)
    b2 = mlp_ref[r + 2:r + 3, :]                          # (1, W)

    w_head = head_ref[0:final_dim, :]                     # (final_dim, OUTW)
    b_head = head_ref[final_dim:final_dim + 1, :]         # (1, OUTW)  bp | bo | bg | 0

    # gripper = gripper_linear(relu(gripper_mlp(proprio_task_emb)))
    h = jnp.maximum(jnp.dot(pt, w1, preferred_element_type=jnp.float32) + b1, 0.0)
    g = jnp.maximum(jnp.dot(h, w2, preferred_element_type=jnp.float32) + b2, 0.0)
    # 32->1 gripper_linear as a lane reduce (VPU/XLU) instead of a padded MXU matmul.
    grip = jnp.sum(g * wg_row, axis=-1, keepdims=True)    # (TB, 1); bias folded into b_head

    # Fused pos|ori head + gripper bias: one matmul, one lane-dense store.
    po = jnp.dot(x, w_head, preferred_element_type=jnp.float32) + b_head   # (TB, OUTW)
    col = lax.broadcasted_iota(jnp.int32, po.shape, 1)
    out_ref[...] = po + jnp.where(col == grip_col, grip, 0.0)
    # TODO(synk): use_mdn=True path (MDN head) and the quaternion-normalization
    # branch are config options not exercised here; only the rpy / non-MDN
    # forward path is implemented.


# ------------------------ parameter packing (once) ------------------------- #
def pack_params(p):
    """Pack the 10 Linear/MLP parameter tensors into two f32 slabs (2 DMAs)."""
    proprio_dim, hidden = p["w1"].shape
    final_dim = p["w2"].shape[1]
    pos_in = p["wp"].shape[1]
    ori_in = p["wo"].shape[1]
    slab_w = max(hidden, final_dim)
    outw = _round_up(pos_in + ori_in + 1, 8)              # pos | ori | grip | pad

    # mlp slab: rows [w1 (P) | w2 (W) | wg_row | b1 | b2], zero padded to (R1, W)
    r1 = _round_up(proprio_dim + slab_w + 3, 8)
    mlp = jnp.zeros((r1, slab_w), jnp.float32)
    mlp = mlp.at[0:proprio_dim, 0:hidden].set(p["w1"])
    mlp = mlp.at[proprio_dim:proprio_dim + hidden, 0:final_dim].set(p["w2"])
    row = proprio_dim + slab_w
    mlp = mlp.at[row, 0:final_dim].set(p["wg"][:, 0])
    mlp = mlp.at[row + 1, 0:hidden].set(p["b1"][0])
    mlp = mlp.at[row + 2, 0:final_dim].set(p["b2"][0])

    # head slab: rows [wp|wo fused (final_dim) | bias row bp|bo|bg], padded to (R2, OUTW)
    r2 = _round_up(final_dim + 1, 8)
    head = jnp.zeros((r2, outw), jnp.float32)
    head = head.at[0:final_dim, 0:pos_in].set(p["wp"])
    head = head.at[0:final_dim, pos_in:pos_in + ori_in].set(p["wo"])
    head = head.at[final_dim, 0:pos_in].set(p["bp"][0])
    head = head.at[final_dim, pos_in:pos_in + ori_in].set(p["bo"][0])
    head = head.at[final_dim, pos_in + ori_in].set(p["bg"][0, 0])

    return dict(mlp=mlp, head=head, proprio_dim=proprio_dim, hidden=hidden,
                final_dim=final_dim, pos_in=pos_in, ori_in=ori_in,
                slab_w=slab_w, outw=outw)


# ------------------------------- wrapper ----------------------------------- #
def query_regression_head(x, proprio_task_emb, packed, *, block_b=256):
    """QueryRegressionHead forward (use_mdn=False, ori_type='rpy').

    Returns (delta_ee_pos, abs_ee_ori, gripper) — note the reference forward
    never applies the sigmoid `to_activation`, so neither do we.
    """
    B, final_dim = x.shape
    proprio_dim = proprio_task_emb.shape[1]
    assert final_dim == packed["final_dim"]
    assert proprio_dim == packed["proprio_dim"]
    pos_in, ori_in, outw = packed["pos_in"], packed["ori_in"], packed["outw"]
    grip_col = pos_in + ori_in

    # Batch tiling: block size multiple of 8; pad batch so the grid divides it.
    block_b = _round_up(block_b, 8)
    tb = min(block_b, _round_up(B, 8))
    b_pad = _round_up(B, tb)
    if b_pad != B:
        x = jnp.pad(x, ((0, b_pad - B), (0, 0)))
        proprio_task_emb = jnp.pad(proprio_task_emb, ((0, b_pad - B), (0, 0)))

    r1, slab_w = packed["mlp"].shape
    r2 = packed["head"].shape[0]

    kernel = functools.partial(
        _qrh_kernel, proprio_dim=proprio_dim, slab_w=slab_w,
        final_dim=final_dim, grip_col=grip_col)

    out = pl.pallas_call(
        kernel,
        out_shape=jax.ShapeDtypeStruct((b_pad, outw), jnp.float32),
        grid_spec=pltpu.PrefetchScalarGridSpec(
            num_scalar_prefetch=0,
            grid=(b_pad // tb,),
            in_specs=[
                pl.BlockSpec((tb, final_dim), lambda i: (i, 0)),     # x block
                pl.BlockSpec((tb, proprio_dim), lambda i: (i, 0)),   # proprio block
                pl.BlockSpec((r1, slab_w), lambda i: (0, 0)),        # mlp slab (resident)
                pl.BlockSpec((r2, outw), lambda i: (0, 0)),          # head slab (resident)
            ],
            out_specs=pl.BlockSpec((tb, outw), lambda i: (i, 0)),
        ),
        compiler_params=pltpu.CompilerParams(
            dimension_semantics=("parallel",)),
    )(x, proprio_task_emb, packed["mlp"], packed["head"])

    out = out[:B]
    pos = out[:, 0:pos_in]
    ori = out[:, pos_in:pos_in + ori_in]
    grip = out[:, grip_col:grip_col + 1]
    return pos, ori, grip


# ------------------------- deterministic parameters ------------------------ #
def make_params(key, proprio_dim, hidden, final_dim, pos_in, ori_in):
    ks = jax.random.split(key, 10)

    def lin(kw, kb, fan_in, fan_out):
        bound = 1.0 / np.sqrt(fan_in)
        w = jax.random.uniform(kw, (fan_in, fan_out), jnp.float32, -bound, bound)
        b = jax.random.uniform(kb, (1, fan_out), jnp.float32, -bound, bound)
        return w, b

    w1, b1 = lin(ks[0], ks[1], proprio_dim, hidden)     # gripper_mlp layer 1
    w2, b2 = lin(ks[2], ks[3], hidden, final_dim)       # gripper_mlp layer 2
    wg, bg = lin(ks[4], ks[5], final_dim, 1)            # gripper_linear
    wp, bp = lin(ks[6], ks[7], final_dim, pos_in)       # pos_linear
    wo, bo = lin(ks[8], ks[9], final_dim, ori_in)       # ori_linear
    return dict(w1=w1, b1=b1, w2=w2, b2=b2, wg=wg, bg=bg,
                wp=wp, bp=bp, wo=wo, bo=bo)


# --------------------------- pure-JAX reference ----------------------------- #
def reference(x, pt, p):
    h = jnp.maximum(pt @ p["w1"] + p["b1"], 0.0)
    g = jnp.maximum(h @ p["w2"] + p["b2"], 0.0)
    gripper = g @ p["wg"] + p["bg"]
    pos = x @ p["wp"] + p["bp"]
    ori = x @ p["wo"] + p["bo"]
    return pos, ori, gripper


if __name__ == "__main__":
    B = 2            # batch
    FINAL_DIM = 32   # cfg.regression_head.final_dim
    PROPRIO = 8      # proprio_task_emb feature dim
    HIDDEN = 32      # gripper_mlp hidden width
    POS_IN = 3       # cfg.regression_head.pos_in_channels
    ORI_IN = 3       # ori_type == 'rpy'

    key = jax.random.PRNGKey(0)
    kx, kp, kparams = jax.random.split(key, 3)

    x = jax.random.normal(kx, (B, FINAL_DIM), jnp.float32)
    proprio_task_emb = jax.random.normal(kp, (B, PROPRIO), jnp.float32)
    params = make_params(kparams, PROPRIO, HIDDEN, FINAL_DIM, POS_IN, ORI_IN)

    packed = pack_params(params)   # done once, outside the hot path

    pos, ori, grip = query_regression_head(x, proprio_task_emb, packed)
    jax.block_until_ready((pos, ori, grip))

    pos_ref, ori_ref, grip_ref = reference(x, proprio_task_emb, params)
    np.testing.assert_allclose(np.asarray(pos), np.asarray(pos_ref), rtol=1e-5, atol=1e-5)
    np.testing.assert_allclose(np.asarray(ori), np.asarray(ori_ref), rtol=1e-5, atol=1e-5)
    np.testing.assert_allclose(np.asarray(grip), np.asarray(grip_ref), rtol=1e-5, atol=1e-5)

    print("KERNEL_OK")
</pallas_src>

<mosaic_0001>
module attributes {stable_mosaic.version = 11 : i64} {
  func.func @_qrh_kernel(%arg0: i32, %arg1: memref<8x32xf32, #tpu.memory_space<vmem>>, %arg2: memref<8x8xf32, #tpu.memory_space<vmem>>, %arg3: memref<48x32xf32, #tpu.memory_space<vmem>>, %arg4: memref<40x8xf32, #tpu.memory_space<vmem>>, %arg5: memref<8x8xf32, #tpu.memory_space<vmem>>) attributes {dimension_semantics = [#tpu.dimension_semantics<parallel>], iteration_bounds = array<i64: 1>, scalar_prefetch = 0 : i64, scratch_operands = 0 : i64, tpu.core_type = #tpu.core_type<tc>, window_params = [{transform_indices = @transform_0, window_bounds = array<i64: 8, 32>}, {transform_indices = @transform_1, window_bounds = array<i64: 8, 8>}, {pipeline_mode = #tpu.pipeline_mode<synchronous>, transform_indices = @transform_2, window_bounds = array<i64: 48, 32>}, {pipeline_mode = #tpu.pipeline_mode<synchronous>, transform_indices = @transform_3, window_bounds = array<i64: 40, 8>}, {transform_indices = @transform_4, window_bounds = array<i64: 8, 8>}]} {
    %c0 = arith.constant 0 : index
    %c0_0 = arith.constant 0 : index
    %0 = vector.load %arg1[%c0, %c0_0] : memref<8x32xf32, #tpu.memory_space<vmem>>, vector<8x32xf32>
    %c0_1 = arith.constant 0 : index
    %c0_2 = arith.constant 0 : index
    %1 = vector.load %arg2[%c0_1, %c0_2] : memref<8x8xf32, #tpu.memory_space<vmem>>, vector<8x8xf32>
    %c0_3 = arith.constant 0 : index
    %c0_4 = arith.constant 0 : index
    %2 = vector.load %arg3[%c0_3, %c0_4] : memref<48x32xf32, #tpu.memory_space<vmem>>, vector<8x32xf32>
    %c8 = arith.constant 8 : index
    %c0_5 = arith.constant 0 : index
    %3 = vector.load %arg3[%c8, %c0_5] : memref<48x32xf32, #tpu.memory_space<vmem>>, vector<32x32xf32>
    %c40 = arith.constant 40 : index
    %c0_6 = arith.constant 0 : index
    %4 = vector.load %arg3[%c40, %c0_6] : memref<48x32xf32, #tpu.memory_space<vmem>>, vector<1x32xf32>
    %c41 = arith.constant 41 : index
    %c0_7 = arith.constant 0 : index
    %5 = vector.load %arg3[%c41, %c0_7] : memref<48x32xf32, #tpu.memory_space<vmem>>, vector<1x32xf32>
    %c42 = arith.constant 42 : index
    %c0_8 = arith.constant 0 : index
    %6 = vector.load %arg3[%c42, %c0_8] : memref<48x32xf32, #tpu.memory_space<vmem>>, vector<1x32xf32>
    %c0_9 = arith.constant 0 : index
    %c0_10 = arith.constant 0 : index
    %7 = vector.load %arg4[%c0_9, %c0_10] : memref<40x8xf32, #tpu.memory_space<vmem>>, vector<32x8xf32>
    %c32 = arith.constant 32 : index
    %c0_11 = arith.constant 0 : index
    %8 = vector.load %arg4[%c32, %c0_11] : memref<40x8xf32, #tpu.memory_space<vmem>>, vector<1x8xf32>
    %cst = arith.constant dense<0.000000e+00> : vector<8x32xf32>
    %9 = tpu.matmul %1, %2, %cst {dimension_numbers = #tpu.dot_dimension_numbers<[1], [0], [0], [1], [0, 0, 1, 1], [], []>} : vector<8x8xf32>, vector<8x32xf32>, vector<8x32xf32> -> vector<8x32xf32>
    %10 = vector.broadcast %5 : vector<1x32xf32> to vector<8x32xf32>
    %11 = arith.addf %9, %10 : vector<8x32xf32>
    %cst_12 = arith.constant 0.000000e+00 : f32
    %12 = vector.broadcast %cst_12 : f32 to vector<8x32xf32>
    %13 = arith.maximumf %11, %12 : vector<8x32xf32>
    %cst_13 = arith.constant dense<0.000000e+00> : vector<8x32xf32>
    %14 = tpu.matmul %13, %3, %cst_13 {dimension_numbers = #tpu.dot_dimension_numbers<[1], [0], [0], [1], [0, 0, 1, 1], [], []>} : vector<8x32xf32>, vector<32x32xf32>, vector<8x32xf32> -> vector<8x32xf32>
    %15 = vector.broadcast %6 : vector<1x32xf32> to vector<8x32xf32>
    %16 = arith.addf %14, %15 : vector<8x32xf32>
    %cst_14 = arith.constant 0.000000e+00 : f32
    %17 = vector.broadcast %cst_14 : f32 to vector<8x32xf32>
    %18 = arith.maximumf %16, %17 : vector<8x32xf32>
    %19 = vector.broadcast %4 : vector<1x32xf32> to vector<8x32xf32>
    %20 = arith.mulf %18, %19 : vector<8x32xf32>
    %cst_15 = arith.constant dense<0.000000e+00> : vector<8xf32>
    %21 = vector.multi_reduction <add>, %20, %cst_15 [1] : vector<8x32xf32> to vector<8xf32>
    %22 = vector.shape_cast %21 : vector<8xf32> to vector<8x1xf32>
    %cst_16 = arith.constant dense<0.000000e+00> : vector<8x8xf32>
    %23 = tpu.matmul %0, %7, %cst_16 {dimension_numbers = #tpu.dot_dimension_numbers<[1], [0], [0], [1], [0, 0, 1, 1], [], []>} : vector<8x32xf32>, vector<32x8xf32>, vector<8x8xf32> -> vector<8x8xf32>
    %24 = vector.broadcast %8 : vector<1x8xf32> to vector<8x8xf32>
    %25 = arith.addf %23, %24 : vector<8x8xf32>
    %26 = tpu.iota {dimensions = array<i32: 1>} : vector<8x8xi32>
    %c6_i32 = arith.constant 6 : i32
    %27 = vector.broadcast %c6_i32 : i32 to vector<8x8xi32>
    %28 = arith.cmpi eq, %26, %27 : vector<8x8xi32>
    %cst_17 = arith.constant 0.000000e+00 : f32
    %29 = vector.shape_cast %22 : vector<8x1xf32> to vector<8x1xf32>
    %30 = vector.broadcast %29 : vector<8x1xf32> to vector<8x8xf32>
    %31 = vector.broadcast %cst_17 : f32 to vector<8x8xf32>
    %32 = arith.select %28, %30, %31 : vector<8x8xi1>, vector<8x8xf32>
    %33 = arith.addf %25, %32 : vector<8x8xf32>
    %c0_18 = arith.constant 0 : index
    %c0_19 = arith.constant 0 : index
    %34 = vector.load %arg5[%c0_18, %c0_19] : memref<8x8xf32, #tpu.memory_space<vmem>>, vector<8x8xf32>
    tpu.vector_store %arg5[%c0_18, %c0_19], %33 {strides = array<i32>} : memref<8x8xf32, #tpu.memory_space<vmem>>, vector<8x8xf32>,
    return
  }
  func.func @transform_0(%arg0: i32) -> (i32, i32) {
    %c0_i32 = arith.constant 0 : i32
    %c0_i32_0 = arith.constant 0 : i32
    return %arg0, %c0_i32 : i32, i32
  }
  func.func @transform_1(%arg0: i32) -> (i32, i32) {
    %c0_i32 = arith.constant 0 : i32
    %c0_i32_0 = arith.constant 0 : i32
    return %arg0, %c0_i32 : i32, i32
  }
  func.func @transform_2(%arg0: i32) -> (i32, i32) {
    %c0_i32 = arith.constant 0 : i32
    %c0_i32_0 = arith.constant 0 : i32
    %c0_i32_1 = arith.constant 0 : i32
    return %c0_i32, %c0_i32_0 : i32, i32
  }
  func.func @transform_3(%arg0: i32) -> (i32, i32) {
    %c0_i32 = arith.constant 0 : i32
    %c0_i32_0 = arith.constant 0 : i32
    %c0_i32_1 = arith.constant 0 : i32
    return %c0_i32, %c0_i32_0 : i32, i32
  }
  func.func @transform_4(%arg0: i32) -> (i32, i32) {
    %c0_i32 = arith.constant 0 : i32
    %c0_i32_0 = arith.constant 0 : i32
    return %arg0, %c0_i32 : i32, i32
  }
}

</mosaic_0001>

<bundles_post_ra>
// kernel: tpu_custom_call.1
= control target key start
LH: loop header
LB: loop body
LE: loop exit
PB: predicated region body
PF: predicated region fallthrough
CT: control target
= control target key end

     0   :  { %vm37_vm0 = vcmask 64512   ;;  %v367_v3 = vmov 0.0   ;;  %vm368_vm1 = vmmov 0   ;;  %s448_s0 = inlined_call_operand.vmem [shape: f32[8,32], index: 0, kind: input, shape index: {}]   ;;  %s449_s1 = inlined_call_operand.vmem [shape: f32[8,8], index: 1, kind: input, shape index: {}]   ;;  %s450_s2 = inlined_call_operand.vmem [shape: f32[48,32], index: 2, kind: input, shape index: {}]   ;;  %s451_s3 = inlined_call_operand.vmem [shape: f32[40,8], index: 3, kind: input, shape index: {}]   ;;  %s452_s4 = inlined_call_operand.hbm [shape: f32[8,8], index: 4, kind: output, shape index: {}]  }
   0x1   :  { %v20_v0 = vld [vmem:[%s450_s2] sm:$0xff]  ;;  %315 = vmatprep.subr.mxu0 %v367_v3  ;;  %317 = vmatprep.mubr.msk.f32.mxu0 %vm368_vm1, %v367_v3 }
   0x2   :  { %v19_v1 = vld [vmem:[%s449_s1] sm:$0xff] }
   0x3   :  { %v24_v2 = vld [vmem:[%s450_s2 + $0x20] sm:$0xff] }
   0x4   :  { %9 = vsyncpa [#allocation3], 0  ;;  %316 = vmatpush3.msra.mxu0 %v20_v0  ;;  %320 = vmatprep.subr.mxu1 %v367_v3  ;;  %v23_v4 = vld [vmem:[%s450_s2 + $0x18] sm:$0xff]  ;;  %v22_v5 = vld [vmem:[%s450_s2 + $0x10] sm:$0xff]  ;;  %vm116_vm2 = vcmask 261120   ;;  %v276_v27 = vlaneseq  ;;  %s369_s17 = smov [#allocation2]  }
   0x5   :  { %318 = vmatmul.mubr.msk.f32.vlgmr.msra.gmra.mxu0 %vm37_vm0, %v19_v1  ;;  %321 = vmatpush3.msra.mxu1 %v24_v2  ;;  %v21_v6 = vld [vmem:[%s450_s2 + $0x8] sm:$0xff]  ;;  %v31_v7 = vld [vmem:[%s451_s3 + $0x18] sm:$0xff]  ;;  %v30_v8 = vld [vmem:[%s451_s3 + $0x10] sm:$0xff]  ;;  %s288_s18 = sshll.u32 %s369_s17, 4  ;;  %s289_s18 = int_to_ptr.vmem [resolvable:$true] %s288_s18 }
   0x6   :  { %322 = vmatprep.subr.mxu1 %v367_v3  ;;  %328 = vmatprep.mubr.msk.f32.mxu1 %vm368_vm1, %v367_v3  ;;  %v29_v9 = vld [vmem:[%s451_s3 + $0x8] sm:$0xff]  ;;  %v28_v10 = vld [vmem:[%s451_s3] sm:$0xff]  ;;  %v277_v28 = vand.u32 127, %v276_v27  ;;  %p350_p1 = scmp.lt.s32.totalorder %s289_s18, %s289_s18 }
   0x7   :  { %331 = vmatprep.subr.mxu0 %v367_v3  ;;  %339 = vmatprep.mubr.msk.f32.mxu0 %vm368_vm1, %v367_v3  ;;  %v18_v11 = vld [vmem:[%s448_s0] sm:$0xff]  ;;  %v296_v12 = vld [vmem:[%s450_s2 + $0x29] ss:$0 sm:$0xff]  ;;  %v298_v19 = vld [vmem:[%s450_s2 + $0x2a] ss:$0 sm:$0xff] }
   0x8   :  { %323 = vmatpush3.msra.mxu1 %v23_v4  ;;  %332 = vmatpush3.msra.mxu0 %v31_v7  ;;  %v300_v23 = vld [vmem:[%s450_s2 + $0x28] ss:$0 sm:$0xff]  ;;  %v301_v29 = vld [vmem:[%s451_s3 + $0x20] ss:$0 sm:$0xff]  ;;  %vm278_vm3 = vcmp.eq.s32.totalorder %v277_v28, 6  ;;  %s345_s2 = scalar_lea.vmem %s289_s18, 128 }
   0x9   :  { %324 = vmatprep.subr.mxu1 %v367_v3  ;;  %333 = vmatprep.subr.mxu0 %v367_v3  ;;  %p346_p0 = scmp.ne.s32.totalorder %s289_s18, %s345_s2  ;;  %p351_p2 = scmp.lt.s32.totalorder %s345_s2, %s345_s2 }
   0xa   :  { %325 = vmatpush3.msra.mxu1 %v22_v5  ;;  %334 = vmatpush3.msra.mxu0 %v30_v8 }
   0xb   :  { %326 = vmatprep.subr.mxu1 %v367_v3  ;;  %335 = vmatprep.subr.mxu0 %v367_v3  ;;  %p352_p3 = por %p351_p2, %p350_p1 }
   0xc   :  { %327 = vmatpush3.msra.mxu1 %v21_v6  ;;  %336 = vmatpush3.msra.mxu0 %v29_v9 }
   0xd   :  { %337 = vmatprep.subr.mxu0 %v367_v3  ;;  %p353_p4 = pnand %p352_p3, %p346_p0 }
   0xe   :  { %338 = vmatpush3.msra.mxu0 %v28_v10 }
   0xf   :  { %340 = vmatmul.mubr.msk.f32.vlgmr.msra.gmra.mxu0 %vm116_vm2, %v18_v11 }
  0xc5   :  { %v107_v13 = vpop.f32.mrf.mxu0 }
  0xc6   :  { %v108_v14 = vadd.f32 %v296_v12, %v107_v13 }
  0xc7   :  { %v319_v15 = vpop.f32.mrf.mxu0 }
  0xc8   :  { %v111_v16 = vmax.f32 %v108_v14, 0.0 }
  0xca   :  { %329 = vmatmul.mubr.msk.f32.vlgmr.msra.gmra.mxu1 %vm116_vm2, %v111_v16 }
  0xcf   :  { %v272_v17 = vpop.f32.mrf.mxu0 }
  0xd0   :  { %v273_v30 = vadd.f32 %v301_v29, %v272_v17 }
  0xd1   :  { %v341_v18 = vpop.f32.mrf.mxu0 }
 0x18a   :  { %v186_v20 = vpop.f32.mrf.mxu1 }
 0x18b   :  { %v187_v21 = vadd.f32 %v298_v19, %v186_v20 }
 0x18c   :  { %v330_v22 = vpop.f32.mrf.mxu1 }
 0x18d   :  { %v190_v24 = vmax.f32 %v187_v21, 0.0 }
 0x18f   :  { %v195_v25 = vmul.f32 %v300_v23, %v190_v24 }
 0x191   :  { %v196_v26 = vsel %vm116_vm2, %v195_v25, 0.0 }
 0x192   :  { %197 = vadd.xlane.f32.xlu0 %v196_v26 }
 0x21b   :  { %v198_v31 = vpop.xlane.xlu0 %197 }
 0x21c   :  { %v279_v32 = vsel %vm278_vm3, %v198_v31, 0.0 }
 0x21d   :  { %v280_v33 = vadd.f32 %v279_v32, %v273_v30 }
 0x21f   :  { %281 = vst.msk [vmem:[#allocation2] sm:$0xff] %vm37_vm0, %v280_v33 }
 0x220   :  { %356 = shalt.err (!%p353_p4)
}
 0x221   :  { %291 = dma.vmem_to_hbm [thread:$0]  %s289_s18, 128, %s452_s4, [#allocation3]  }
 0x222   :  { %365 = dma.done.wait [#allocation3], 128  }
 0x223   :  { %366 = vsyncadd [#allocation3], 4294967168 }
 0x224   :  { %295 = vsyncpa [#allocation3], 1 }

</bundles_post_ra>
